<compile_context>
chip_gen: v6e
topology: v6e:2x2x1
jax: 0.10.0
libtpu: 0.0.40
codegen_flags: <defaults>
</compile_context>

<pallas_src>
import jax
import jax.numpy as jnp
from jax import lax
from jax.experimental import pallas as pl
from jax.experimental.pallas import tpu as pltpu

_LANES = 128
_MAX_BLOCK_ROWS = 4096       # 4096 * 128 * 4 B = 2 MiB per f32 input block
_TARGET_STEPS = 4            # aim for >= 4 grid steps before capping block size


def _round_up(x, m):
    return ((x + m - 1) // m) * m


def _make_dice_sums_kernel(rows, block_rows, chunk_rows, lanes):
    """Reduction kernel over a (rows, lanes) array tiled in (block_rows, lanes)
    grid blocks, processed chunk_rows rows at a time."""
    steps = pl.cdiv(rows, block_rows)
    nchunks_full = block_rows // chunk_rows
    tail_rows = rows - (steps - 1) * block_rows        # valid rows in last block
    tail_is_full = tail_rows == block_rows
    n_tail_full_chunks = tail_rows // chunk_rows
    tail_rem_rows = tail_rows - n_tail_full_chunks * chunk_rows

    def kernel(p_ref, t_ref, out_pt_ref, out_s_ref, acc_pt, acc_s):
        j = pl.program_id(0)
        last = pl.num_programs(0) - 1

        @pl.when(j == 0)
        def _init():
            acc_pt[...] = jnp.zeros_like(acc_pt)
            acc_s[...] = jnp.zeros_like(acc_s)

        def accum_chunks(n_chunks):
            # Fused per-(chunk_rows, 128) loop: 2 loads, 1 mul, 3 adds per
            # chunk; no full-block f32 temporaries.
            if n_chunks <= 0:
                return

            def body(c, carry):
                r = pl.multiple_of(c * chunk_rows, chunk_rows)
                p = p_ref[pl.ds(r, chunk_rows), :].astype(jnp.float32)
                t = t_ref[pl.ds(r, chunk_rows), :].astype(jnp.float32)
                acc_pt[...] += p * t
                acc_s[...] += p + t
                return carry

            lax.fori_loop(0, n_chunks, body, 0, unroll=min(4, n_chunks))

        def accum_masked_chunk(chunk_idx, valid_rows):
            # Final (partial) chunk of the last block: rows past the end of the
            # input have unspecified VMEM contents, so mask them to zero.
            r = pl.multiple_of(chunk_idx * chunk_rows, chunk_rows)
            p = p_ref[pl.ds(r, chunk_rows), :].astype(jnp.float32)
            t = t_ref[pl.ds(r, chunk_rows), :].astype(jnp.float32)
            mask = lax.broadcasted_iota(jnp.int32, (chunk_rows, lanes), 0) < valid_rows
            p = jnp.where(mask, p, 0.0)
            t = jnp.where(mask, t, 0.0)
            acc_pt[...] += p * t
            acc_s[...] += p + t

        if tail_is_full:
            accum_chunks(nchunks_full)
        else:
            @pl.when(j != last)
            def _full_blocks():
                accum_chunks(nchunks_full)

            @pl.when(j == last)
            def _tail_block():
                accum_chunks(n_tail_full_chunks)
                if tail_rem_rows > 0:
                    accum_masked_chunk(n_tail_full_chunks, tail_rem_rows)

        @pl.when(j == last)
        def _finalize():
            out_pt_ref[...] = acc_pt[...]
            out_s_ref[...] = acc_s[...]

    return kernel


def dice_loss(predictions, targets, smooth=1e-6, reduction="mean"):
    """Pallas equivalent of DiceLoss.forward (binary segmentation Dice)."""
    n = predictions.size
    p_flat = predictions.reshape(-1)
    t_flat = targets.reshape(-1)

    p_item = jnp.dtype(predictions.dtype).itemsize
    t_item = jnp.dtype(targets.dtype).itemsize
    # Sublane packing of the narrowest dtype: 8 rows (4B), 16 (2B), 32 (1B).
    chunk_rows = 8 * max(1, 4 // min(p_item, t_item))

    rows = pl.cdiv(n, _LANES)
    rows_padded = max(rows, chunk_rows)
    padded_elems = rows_padded * _LANES
    if padded_elems != n:
        # Only hit when n is not a multiple of 128 (or is tiny).  Zero padding
        # is sum-safe; the common segmentation case stays copy-free.
        p_flat = jnp.pad(p_flat, (0, padded_elems - n))
        t_flat = jnp.pad(t_flat, (0, padded_elems - n))
    rows = rows_padded
    p2 = p_flat.reshape(rows, _LANES)
    t2 = t_flat.reshape(rows, _LANES)

    # Adaptive block size: >= _TARGET_STEPS steps when possible, capped at the
    # ~2 MiB roofline plateau, never larger than the input (row tail is handled
    # by in-kernel masking, not padding).
    block_rows = _round_up(max(pl.cdiv(rows, _TARGET_STEPS), chunk_rows), chunk_rows)
    block_rows = min(block_rows, _MAX_BLOCK_ROWS, (rows // chunk_rows) * chunk_rows)
    block_rows = max(block_rows, chunk_rows)
    steps = pl.cdiv(rows, block_rows)

    kernel = _make_dice_sums_kernel(rows, block_rows, chunk_rows, _LANES)
    partial_shape = jax.ShapeDtypeStruct((chunk_rows, _LANES), jnp.float32)

    out_pt, out_s = pl.pallas_call(
        kernel,
        out_shape=(partial_shape, partial_shape),
        grid_spec=pltpu.PrefetchScalarGridSpec(
            num_scalar_prefetch=0,
            grid=(steps,),
            in_specs=[
                pl.BlockSpec((block_rows, _LANES), lambda j: (j, 0)),
                pl.BlockSpec((block_rows, _LANES), lambda j: (j, 0)),
            ],
            out_specs=[
                pl.BlockSpec((chunk_rows, _LANES), lambda j: (0, 0)),
                pl.BlockSpec((chunk_rows, _LANES), lambda j: (0, 0)),
            ],
            scratch_shapes=[
                pltpu.VMEM((chunk_rows, _LANES), jnp.float32),
                pltpu.VMEM((chunk_rows, _LANES), jnp.float32),
            ],
        ),
        compiler_params=pltpu.CompilerParams(
            dimension_semantics=("arbitrary",)),
        cost_estimate=pl.CostEstimate(
            flops=4 * n,
            transcendentals=0,
            bytes_accessed=int(n * (p_item + t_item)
                               + 2 * chunk_rows * _LANES * 4)),
    )(p2, t2)

    # Tiny epilogue: cross-lane sums over two (chunk_rows, 128) partials.
    intersection = jnp.sum(out_pt)
    denom = jnp.sum(out_s)                 # == sum(p) + sum(t)

    dice_score = (2.0 * intersection + smooth) / (denom + smooth)
    loss = 1.0 - dice_score

    if reduction == "mean":
        return loss
    elif reduction == "sum":
        return loss * n
    else:  # 'none' — reference also returns the scalar dice loss
        return loss


def _dice_loss_ref(predictions, targets, smooth=1e-6, reduction="mean"):
    """Pure-JAX reference mirroring the PyTorch forward, for validation."""
    p = predictions.reshape(-1).astype(jnp.float32)
    t = targets.reshape(-1).astype(jnp.float32)
    intersection = jnp.sum(p * t)
    dice_score = (2.0 * intersection + smooth) / (jnp.sum(p) + jnp.sum(t) + smooth)
    loss = 1.0 - dice_score
    if reduction == "mean":
        return loss
    elif reduction == "sum":
        return loss * p.size
    return loss


if __name__ == "__main__":
    key = jax.random.PRNGKey(0)
    k_pred, k_targ = jax.random.split(key)

    B, C, H, W = 2, 4, 16, 16
    # predictions are probabilities in [0, 1]; targets are binary masks
    predictions = jax.nn.sigmoid(
        jax.random.normal(k_pred, (B, C, H, W), jnp.float32))
    targets = jax.random.bernoulli(
        k_targ, p=0.5, shape=(B, C, H, W)).astype(jnp.float32)

    out = jax.block_until_ready(dice_loss(predictions, targets))
    ref = jax.block_until_ready(_dice_loss_ref(predictions, targets))
    assert jnp.allclose(out, ref, rtol=1e-5, atol=1e-6), (out, ref)

    print("KERNEL_OK")
</pallas_src>

<mosaic_0001>
module attributes {stable_mosaic.version = 11 : i64} {
  func.func @kernel(%arg0: i32, %arg1: memref<8x128xf32, #tpu.memory_space<vmem>>, %arg2: memref<8x128xf32, #tpu.memory_space<vmem>>, %arg3: memref<8x128xf32, #tpu.memory_space<vmem>>, %arg4: memref<8x128xf32, #tpu.memory_space<vmem>>, %arg5: memref<8x128xf32, #tpu.memory_space<vmem>>, %arg6: memref<8x128xf32, #tpu.memory_space<vmem>>) attributes {dimension_semantics = [#tpu.dimension_semantics<arbitrary>], iteration_bounds = array<i64: 2>, scalar_prefetch = 0 : i64, scratch_operands = 2 : i64, tpu.core_type = #tpu.core_type<tc>, window_params = [{transform_indices = @transform_0, window_bounds = array<i64: 8, 128>}, {transform_indices = @transform_1, window_bounds = array<i64: 8, 128>}, {pipeline_mode = #tpu.pipeline_mode<synchronous>, transform_indices = @transform_2, window_bounds = array<i64: 8, 128>}, {pipeline_mode = #tpu.pipeline_mode<synchronous>, transform_indices = @transform_3, window_bounds = array<i64: 8, 128>}]} {
    %c0_i32 = arith.constant 0 : i32
    %0 = arith.cmpi eq, %arg0, %c0_i32 : i32
    %1 = arith.extui %0 : i1 to i32
    %c0_i32_0 = arith.constant 0 : i32
    %2 = arith.cmpi ne, %1, %c0_i32_0 : i32
    scf.if %2 {
      %cst = arith.constant 0.000000e+00 : f32
      %20 = vector.broadcast %cst : f32 to vector<8x128xf32>
      %c0_13 = arith.constant 0 : index
      %c0_14 = arith.constant 0 : index
      %21 = vector.load %arg5[%c0_13, %c0_14] : memref<8x128xf32, #tpu.memory_space<vmem>>, vector<8x128xf32>
      tpu.vector_store %arg5[%c0_13, %c0_14], %20 {strides = array<i32>} : memref<8x128xf32, #tpu.memory_space<vmem>>, vector<8x128xf32>,
      %cst_15 = arith.constant 0.000000e+00 : f32
      %22 = vector.broadcast %cst_15 : f32 to vector<8x128xf32>
      %c0_16 = arith.constant 0 : index
      %c0_17 = arith.constant 0 : index
      %23 = vector.load %arg6[%c0_16, %c0_17] : memref<8x128xf32, #tpu.memory_space<vmem>>, vector<8x128xf32>
      tpu.vector_store %arg6[%c0_16, %c0_17], %22 {strides = array<i32>} : memref<8x128xf32, #tpu.memory_space<vmem>>, vector<8x128xf32>,
    } else {
    }
    %c0_i32_1 = arith.constant 0 : i32
    %c8_i32 = arith.constant 8 : i32
    %3 = arith.muli %c0_i32_1, %c8_i32 : i32
    %4 = tpu.assume_multiple %3, 8 : i32
    %5 = arith.index_cast %4 : i32 to index
    %c0 = arith.constant 0 : index
    %6 = vector.load %arg1[%5, %c0] : memref<8x128xf32, #tpu.memory_space<vmem>>, vector<8x128xf32>
    %7 = arith.index_cast %4 : i32 to index
    %c0_2 = arith.constant 0 : index
    %8 = vector.load %arg2[%7, %c0_2] : memref<8x128xf32, #tpu.memory_space<vmem>>, vector<8x128xf32>
    %c0_3 = arith.constant 0 : index
    %c0_4 = arith.constant 0 : index
    %9 = vector.load %arg5[%c0_3, %c0_4] : memref<8x128xf32, #tpu.memory_space<vmem>>, vector<8x128xf32>
    %10 = arith.mulf %6, %8 : vector<8x128xf32>
    %11 = arith.addf %9, %10 : vector<8x128xf32>
    %c0_5 = arith.constant 0 : index
    %c0_6 = arith.constant 0 : index
    %12 = vector.load %arg5[%c0_5, %c0_6] : memref<8x128xf32, #tpu.memory_space<vmem>>, vector<8x128xf32>
    tpu.vector_store %arg5[%c0_5, %c0_6], %11 {strides = array<i32>} : memref<8x128xf32, #tpu.memory_space<vmem>>, vector<8x128xf32>,
    %c0_7 = arith.constant 0 : index
    %c0_8 = arith.constant 0 : index
    %13 = vector.load %arg6[%c0_7, %c0_8] : memref<8x128xf32, #tpu.memory_space<vmem>>, vector<8x128xf32>
    %14 = arith.addf %6, %8 : vector<8x128xf32>
    %15 = arith.addf %13, %14 : vector<8x128xf32>
    %c0_9 = arith.constant 0 : index
    %c0_10 = arith.constant 0 : index
    %16 = vector.load %arg6[%c0_9, %c0_10] : memref<8x128xf32, #tpu.memory_space<vmem>>, vector<8x128xf32>
    tpu.vector_store %arg6[%c0_9, %c0_10], %15 {strides = array<i32>} : memref<8x128xf32, #tpu.memory_space<vmem>>, vector<8x128xf32>,
    %c1_i32 = arith.constant 1 : i32
    %c1_i32_11 = arith.constant 1 : i32
    %17 = arith.cmpi eq, %arg0, %c1_i32_11 : i32
    %18 = arith.extui %17 : i1 to i32
    %c0_i32_12 = arith.constant 0 : i32
    %19 = arith.cmpi ne, %18, %c0_i32_12 : i32
    scf.if %19 {
      %c0_13 = arith.constant 0 : index
      %c0_14 = arith.constant 0 : index
      %20 = vector.load %arg5[%c0_13, %c0_14] : memref<8x128xf32, #tpu.memory_space<vmem>>, vector<8x128xf32>
      %c0_15 = arith.constant 0 : index
      %c0_16 = arith.constant 0 : index
      %21 = vector.load %arg3[%c0_15, %c0_16] : memref<8x128xf32, #tpu.memory_space<vmem>>, vector<8x128xf32>
      tpu.vector_store %arg3[%c0_15, %c0_16], %20 {strides = array<i32>} : memref<8x128xf32, #tpu.memory_space<vmem>>, vector<8x128xf32>,
      %c0_17 = arith.constant 0 : index
      %c0_18 = arith.constant 0 : index
      %22 = vector.load %arg6[%c0_17, %c0_18] : memref<8x128xf32, #tpu.memory_space<vmem>>, vector<8x128xf32>
      %c0_19 = arith.constant 0 : index
      %c0_20 = arith.constant 0 : index
      %23 = vector.load %arg4[%c0_19, %c0_20] : memref<8x128xf32, #tpu.memory_space<vmem>>, vector<8x128xf32>
      tpu.vector_store %arg4[%c0_19, %c0_20], %22 {strides = array<i32>} : memref<8x128xf32, #tpu.memory_space<vmem>>, vector<8x128xf32>,
    } else {
    }
    return
  }
  func.func @transform_0(%arg0: i32) -> (i32, i32) {
    %c0_i32 = arith.constant 0 : i32
    %c0_i32_0 = arith.constant 0 : i32
    return %arg0, %c0_i32 : i32, i32
  }
  func.func @transform_1(%arg0: i32) -> (i32, i32) {
    %c0_i32 = arith.constant 0 : i32
    %c0_i32_0 = arith.constant 0 : i32
    return %arg0, %c0_i32 : i32, i32
  }
  func.func @transform_2(%arg0: i32) -> (i32, i32) {
    %c0_i32 = arith.constant 0 : i32
    %c0_i32_0 = arith.constant 0 : i32
    %c0_i32_1 = arith.constant 0 : i32
    return %c0_i32, %c0_i32_0 : i32, i32
  }
  func.func @transform_3(%arg0: i32) -> (i32, i32) {
    %c0_i32 = arith.constant 0 : i32
    %c0_i32_0 = arith.constant 0 : i32
    %c0_i32_1 = arith.constant 0 : i32
    return %c0_i32, %c0_i32_0 : i32, i32
  }
}

</mosaic_0001>

<bundles_post_ra>
// kernel: tpu_custom_call.1
= control target key start
LH: loop header
LB: loop body
LE: loop exit
PB: predicated region body
PF: predicated region fallthrough
CT: control target
= control target key end

     0   :  { %9 = vsyncpa [#allocation5], 0  ;;  %s762_s0 = inlined_call_operand.hbm [shape: f32[16,128], index: 0, kind: input, shape index: {}]   ;;  %s763_s1 = inlined_call_operand.hbm [shape: f32[16,128], index: 1, kind: input, shape index: {}]   ;;  %s764_s2 = inlined_call_operand.hbm [shape: f32[8,128], index: 2, kind: output, shape index: {0}]   ;;  %s765_s3 = inlined_call_operand.hbm [shape: f32[8,128], index: 3, kind: output, shape index: {1}]  }
   0x1   :  { %11 = vsyncpa [#allocation5 + $0x1], 0 }
   0x2   :  { %12 = vsyncpa [#allocation8], 0 }
   0x3   :  { %14 = vsyncpa [#allocation8 + $0x1], 0 }
   0x4   :  { %15 = vsyncpa [#allocation6], 0 }
   0x5   :  { %16 = vsyncpa [#allocation11], 0  ;;  %s590_s12 = smov 0   ;;  %s592_s13 = smov 0  }
   0x6   :  { %s594_s14 = smov 0   ;;  %s596_s15 = smov 0  }
   0x7 LB: > { %s609_s16 = sadd.s32 4294967295, %s563_s15   ;;  %s612_s17 = sadd.s32 1, %s563_s15   ;;  %s563_s15 = sphi %s596_s15, %s777_s15   ;;  %s559_s14 = sphi %s594_s14, %s776_s14   ;;  %s555_s13 = sphi %s592_s13, %s775_s13   ;;  %s551_s12 = sphi %s590_s12, %s774_s12  }
   0x8   : > { %s26_s18 = ssub.s32 %s563_s15, %s612_s17  ;;  %s29_s19 = sadd.s32 1, %s559_s14 }
   0x9   : > { %p27_p0 = scmp.eq.s32.totalorder %s26_s18, 0  ;;  %p36_p1 = scmp.ne.s32.totalorder %s559_s14, %s555_s13 }
   0xa   : > { %p37_p2 = scmp.eq.s32.totalorder %s563_s15, 0  ;;  %p42_p3 = scmp.ne.s32.totalorder %s555_s13, %s551_s12 }
   0xb   : > { %s622_s20 = scalar_select %p27_p0, %s559_s14, %s29_s19  }
   0xc   : > { %p38_p4 = por %p37_p2, %p36_p1  ;;  %p43_p5 = scmp.eq.s32.totalorder %s609_s16, 0 }
   0xd   : > { %p373_p6 = scmp.lt.s32.totalorder %s563_s15, 2  ;;  %s631_s22 = sand.u32 1, %s559_s14  }
   0xe   : > { %p626_p7 = por %p43_p5, %p42_p3  ;;  %s339_s23 = sshll.u32 %s631_s22, 3 }
   0xf   : > { %s340_s24 = sshll.u32 %s563_s15, 7  ;;  %s138_s28 = scalar_lea.vmem [#allocation4], %s339_s23 }
  0x10   : > { %s767_s21 = scalar_select %p626_p7, 1, 0 }
  0x11   : > { %s640_s27 = scalar_lea.hbm %s762_s0, %s340_s24  ;;  %s145_s29 = sshll.u32 %s138_s28, 4  ;;  %s644_s29 = int_to_ptr.vmem [resolvable:$true] %s145_s29 }
  0x12   : > { %p646_p8 = pnand %p373_p6, %p38_p4  ;;  %s135_s4 = scalar_lea.sflag [#allocation5], %s631_s22 }
  0x13   : > { %s413_s5 = scalar_lea.hbm %s640_s27, 128  ;;  %s418_s8 = scalar_lea.hbm %s762_s0, 256 }
  0x14   : > { %p414_p11 = scmp.ne.s32.totalorder %s640_s27, %s413_s5  ;;  %p415_p12 = pneg %p646_p8 }
  0x15   : > { %p419_p1 = scmp.lt.s32.totalorder %s640_s27, %s762_s0  ;;  %p420_p2 = scmp.lt.s32.totalorder %s418_s8, %s413_s5 }
  0x16   : > { %p416_p13 = pnand %p415_p12, %p414_p11 }
  0x17   : > { %p421_p3 = por %p420_p2, %p419_p1 }
  0x18   : > { %p417_p0 = pneg %p416_p13 }
  0x1a   : > { %p422_p4 = pnand %p421_p3, %p417_p0 }
  0x1c   : > { %425 = shalt.err (!%p422_p4)
}
  0x1d   : > { %s426_s11 = scalar_lea.vmem %s644_s29, 128  ;;  %s565_s12 = smov [#allocation4]  }
  0x1e   : > { %p427_p5 = scmp.ne.s32.totalorder %s644_s29, %s426_s11  ;;  %s431_s18 = sshll.u32 %s565_s12, 4  ;;  %s432_s18 = int_to_ptr.vmem [resolvable:$false] %s431_s18 }
  0x1f   : > { %s433_s19 = scalar_lea.vmem %s432_s18, 256  ;;  %p434_p13 = scmp.lt.s32.totalorder %s644_s29, %s432_s18 }
  0x20   : > { %p429_p6 = pnand %p427_p5, %p415_p12  ;;  %p435_p9 = scmp.lt.s32.totalorder %s433_s19, %s426_s11 }
  0x22   : > { %p430_p11 = pneg %p429_p6  ;;  %p436_p10 = por %p435_p9, %p434_p13 }
  0x24   : > { %p437_p1 = pnand %p436_p10, %p430_p11 }
  0x26   : > { %440 = shalt.err (!%p437_p1)
}
  0x27   : > { %369 = dma.hbm_to_vmem [thread:$0]  (!%p646_p8), %s640_s27, 128, %s644_s29, %s135_s4  }
  0x28   : > { %p769_p0 = scmp.lt.s32.totalorder %s563_s15, 3  ;;  %p770_p2 = scmp.ge.s32.totalorder %s563_s15, 1 }
  0x29   : > { %s690_s5 = scalar_lea.hbm %s763_s1, %s340_s24  ;;  %s156_s6 = scalar_lea.vmem [#allocation7], %s339_s23 }
  0x2a   : > { %p681_p3 = pnand %p770_p2, %p769_p0  ;;  %s163_s7 = sshll.u32 %s156_s6, 4  ;;  %s164_s7 = int_to_ptr.vmem [resolvable:$true] %s163_s7 }
  0x2b   : > { %s153_s27 = scalar_lea.sflag [#allocation8], %s631_s22  ;;  %s441_s29 = scalar_lea.hbm %s690_s5, 128 }
  0x2c   : > { %s771_s25 = scalar_select %p681_p3, 1, 0 }
  0x2d   : > { %p442_p9 = scmp.ne.s32.totalorder %s690_s5, %s441_s29  ;;  %s446_s8 = scalar_lea.hbm %s763_s1, 256 }
  0x2e   : > { %p447_p5 = scmp.lt.s32.totalorder %s690_s5, %s763_s1  ;;  %p448_p6 = scmp.lt.s32.totalorder %s446_s8, %s441_s29 }
  0x2f   : > { %p444_p10 = pnand %p442_p9, %p415_p12 }
  0x30   : > { %p449_p11 = por %p448_p6, %p447_p5 }
  0x31   : > { %p445_p4 = pneg %p444_p10 }
  0x33   : > { %p450_p13 = pnand %p449_p11, %p445_p4 }
  0x35   : > { %453 = shalt.err (!%p450_p13)
}
  0x36   : > { %s454_s23 = scalar_lea.vmem %s164_s7, 128  ;;  %s566_s22 = smov [#allocation7]  }
  0x37   : > { %p455_p1 = scmp.ne.s32.totalorder %s164_s7, %s454_s23  ;;  %s459_s10 = sshll.u32 %s566_s22, 4  ;;  %s460_s10 = int_to_ptr.vmem [resolvable:$false] %s459_s10 }
  0x38   : > { %s461_s11 = scalar_lea.vmem %s460_s10, 256  ;;  %p462_p9 = scmp.lt.s32.totalorder %s164_s7, %s460_s10 }
  0x39   : > { %p457_p0 = pnand %p455_p1, %p415_p12  ;;  %p463_p10 = scmp.lt.s32.totalorder %s461_s11, %s454_s23 }
  0x3b   : > { %p458_p2 = pneg %p457_p0  ;;  %p464_p7 = por %p463_p10, %p462_p9 }
  0x3d   : > { %p465_p3 = pnand %p464_p7, %p458_p2 }
  0x3f   : > { %468 = shalt.err (!%p465_p3)
}
  0x40   : > { %372 = dma.hbm_to_vmem [thread:$0]  (!%p646_p8), %s690_s5, 128, %s164_s7, %s153_s27  }
  0x41   : > { %p772_p4 = scmp.ne.s32.totalorder %s771_s25, 0 }
  0x42   : > { %s174_s12 = sand.u32 (!%p772_p4), 1, %s555_s13   ;;  %p773_p12 = scmp.ne.s32.totalorder (!%p772_p4), %s767_s21, 0 }
  0x43   : > { %172 = sbr.rel (%p772_p4) target bundleno = 130 (0x82), region = 28  ;;  %s344_s18 = sshll.u32 (!%p772_p4), %s174_s12, 3 }
  0x44   : > { %s175_s19 = scalar_lea.sflag (!%p772_p4), [#allocation5], %s174_s12  ;;  %s178_s26 = scalar_lea.vmem (!%p772_p4), [#allocation4], %s344_s18 }
  0x48   : > { %534 = dma.done.wait (%p773_p12), %s175_s19, 128  }
  0x49   : > { %536 = vsyncadd (%p773_p12), %s175_s19, 4294967168  ;;  %s184_s28 = scalar_lea.sflag [#allocation8], %s174_s12  ;;  %s187_s6 = scalar_lea.vmem [#allocation7], %s344_s18 }
  0x4a   : > { %538 = dma.done.wait (%p773_p12), %s184_s28, 128  }
  0x4b   : > { %540 = vsyncadd (%p773_p12), %s184_s28, 4294967168  ;;  %p346_p7 = scmp.ne.s32.totalorder %s609_s16, 0 }
  0x4d   : > { %213 = sbr.rel (%p346_p7) target bundleno = 84 (0x54), region = 40 }
  0x52   : > { %v567_v0 = vmov 0.0  }
  0x53   : > { %214 = vst [vmem:[#allocation2] sm:$0xff] %v567_v0  ;;  %215 = vst [vmem:[#allocation3] sm:$0xff] %v567_v0 }
  0x54 PF: > { %v216_v1 = vld [vmem:[%s178_s26] sm:$0xff]  ;;  %v217_v2 = vld [vmem:[%s187_s6] sm:$0xff]  ;;  %p347_p8 = scmp.ne.s32.totalorder %s609_s16, 1 }
  0x55   : > { %v219_v4 = vmul.f32 %v217_v2, %v216_v1  ;;  %v223_v6 = vadd.f32 %v217_v2, %v216_v1 }
  0x59   : > { %229 = sbr.rel (%p347_p8) target bundleno = 102 (0x66), region = 44 }
  0x5a   : > { %v218_v3 = vld [vmem:[#allocation2] sm:$0xff]  ;;  %v222_v5 = vld [vmem:[#allocation3] sm:$0xff] }
  0x5b   : > { %v220_v7 = vadd.f32 %v219_v4, %v218_v3  ;;  %v224_v8 = vadd.f32 %v223_v6, %v222_v5 }
  0x5d   : > { %221 = vst [vmem:[#allocation2] sm:$0xff] %v220_v7  ;;  %225 = vst [vmem:[#allocation3] sm:$0xff] %v224_v8 }
  0x64   : > { %v230_v9 = vld [vmem:[#allocation2] sm:$0xff]  ;;  %v232_v10 = vld [vmem:[#allocation3] sm:$0xff] }
  0x65   : > { %231 = vst [vmem:[#allocation9] sm:$0xff] %v230_v9  ;;  %233 = vst [vmem:[#allocation10] sm:$0xff] %v232_v10 }
  0x66 PF: > { %p374_p3 = scmp.eq.s32.totalorder %s609_s16, 1  ;;  %s568_s21 = smov [#allocation9]  }
  0x67   : > { %s241_s30 = sshll.u32 %s568_s21, 4  ;;  %s569_s25 = smov [#allocation10]   ;;  %s242_s30 = int_to_ptr.vmem [resolvable:$true] %s241_s30 }
  0x68   : > { %s252_s5 = sshll.u32 %s569_s25, 4  ;;  %s469_s7 = scalar_lea.vmem %s242_s30, 128  ;;  %s253_s5 = int_to_ptr.vmem [resolvable:$true] %s252_s5 }
  0x69   : > { %p470_p5 = scmp.ne.s32.totalorder %s242_s30, %s469_s7  ;;  %p476_p13 = scmp.lt.s32.totalorder %s242_s30, %s242_s30 }
  0x6a   : > { %p477_p1 = scmp.lt.s32.totalorder %s469_s7, %s469_s7 }
  0x6b   : > { %p471_p6 = pnand %p470_p5, %p374_p3 }
  0x6c   : > { %p478_p0 = por %p477_p1, %p476_p13 }
  0x6d   : > { %p472_p11 = pneg %p471_p6 }
  0x6f   : > { %p479_p2 = pnand %p478_p0, %p472_p11 }
  0x71   : > { %482 = shalt.err (!%p479_p2)
}
  0x72   : > { %359 = dma.vmem_to_hbm [thread:$0]  (%p374_p3), %s242_s30, 128, %s764_s2, [#allocation6]  }
  0x73   : > { %s493_s15 = scalar_lea.vmem %s253_s5, 128  ;;  %p500_p12 = scmp.lt.s32.totalorder %s253_s5, %s253_s5 }
  0x74   : > { %p494_p9 = scmp.ne.s32.totalorder %s253_s5, %s493_s15  ;;  %p501_p7 = scmp.lt.s32.totalorder %s493_s15, %s493_s15 }
  0x76   : > { %p495_p10 = pnand %p494_p9, %p374_p3  ;;  %p502_p8 = por %p501_p7, %p500_p12 }
  0x78   : > { %p496_p4 = pneg %p495_p10 }
  0x7a   : > { %p503_p5 = pnand %p502_p8, %p496_p4 }
  0x7c   : > { %506 = shalt.err (!%p503_p5)
}
  0x7d   : > { %361 = dma.vmem_to_hbm [thread:$0]  (%p374_p3), %s253_s5, 128, %s765_s3, [#allocation11]  }
  0x7e   : > { %542 = dma.done.wait (%p374_p3), [#allocation6], 128  }
  0x7f   : > { %544 = vsyncadd (%p374_p3), [#allocation6], 4294967168 }
  0x80   : > { %546 = dma.done.wait (%p374_p3), [#allocation11], 128  }
  0x81   : > { %548 = vsyncadd (%p374_p3), [#allocation11], 4294967168 }
  0x82 PF: > { %p19_p6 = scmp.ge.s32.totalorder %s612_s17, 4   ;;  %s774_s12 = smov %s555_s13 }
  0x83   : > { %s775_s13 = smov %s559_s14  ;;  %s776_s14 = smov %s622_s20 }
  0x84   : > { %s777_s15 = smov %s612_s17  ;;  %21 = sbr.rel (!%p19_p6) target bundleno = 7 (0x7), region = 94 }
  0x89   :  { %269 = vsyncpa [#allocation5], 1 }
  0x8a   :  { %271 = vsyncpa [#allocation5 + $0x1], 1 }
  0x8b   :  { %272 = vsyncpa [#allocation8], 1 }
  0x8c   :  { %274 = vsyncpa [#allocation8 + $0x1], 1 }
  0x8d   :  { %275 = vsyncpa [#allocation6], 1 }
  0x8e   :  { %277 = vsyncpa [#allocation6 + $0x1], 1 }
  0x8f   :  { %278 = vsyncpa [#allocation11], 1 }

</bundles_post_ra>
